<compile_context>
chip_gen: v6e
topology: v6e:2x2x1
jax: 0.10.0
libtpu: 0.0.40
codegen_flags: <defaults>
</compile_context>

<pallas_src>
import jax
import jax.numpy as jnp
import numpy as np
from jax.experimental import pallas as pl
from jax.experimental.pallas import tpu as pltpu


def _round_up(x: int, m: int) -> int:
    return (x + m - 1) // m * m


def _conv_block_kernel(p_ref, w_ref, bias_ref, o_ref):
    # p_ref   : (1, 4, TM, 9*Cin)  bf16 im2col patches, one slab per 2x2-pool phase
    # w_ref   : (9*Cin, Cout_pad)  bf16 weights with the BN scale pre-folded in
    # bias_ref: (1, Cout_pad)      f32  fused conv-bias + BN bias
    # o_ref   : (1, TM, Cout_pad)  bf16 pooled output block (lane-dense)
    w = w_ref[...]
    # MaxPool2d(2) = running max over the 4 conv-position phases; bias-add and ReLU are
    # monotone so they are applied once, after the max.
    m = jnp.dot(p_ref[0, 0], w, preferred_element_type=jnp.float32)
    for ph in range(1, 4):
        m = jnp.maximum(m, jnp.dot(p_ref[0, ph], w, preferred_element_type=jnp.float32))
    o_ref[0] = jnp.maximum(m + bias_ref[...], 0.0).astype(o_ref.dtype)


def _pick_tm(m_total: int, k_dim: int, cout_pad: int) -> int:
    # Per-TM-row VMEM bytes: double-buffered bf16 patch block (4 phases) + double-buffered
    # bf16 output block.  Budget leaves headroom under v7x's 64 MiB physical VMEM.
    per_row = 2 * (4 * k_dim * 2) + 2 * (cout_pad * 2)
    weights_bytes = 2 * (k_dim * cout_pad * 2 + cout_pad * 4)      # double-buffered constants
    budget = 40 * 1024 * 1024
    cap = max(256, ((budget - weights_bytes) // per_row) // 256 * 256)
    tm = min(1024, cap)                                            # multiple of 256 (MXU M)
    if m_total <= tm:
        return _round_up(m_total, 16)                              # single block, bf16 sublane aligned
    return tm


def conv_block_forward(x_nchw, w_oihw, b_conv, gamma, beta, run_mean, run_var, eps=1e-5):
    n, cin, h, w = x_nchw.shape
    cout = w_oihw.shape[0]
    hc, wc = h + 2, w + 2                 # conv output: H + 2*pad - k + 1 = H + 2
    hout, wout = hc // 2, wc // 2         # MaxPool2d(2) floor-truncates odd sizes (handled)
    k_dim = 9 * cin
    cout_pad = _round_up(cout, 128)       # lane-dense output channels

    m_total = hout * wout                 # pooled pixels per image
    tm = _pick_tm(m_total, k_dim, cout_pad)
    if n == 1 and m_total <= tm and m_total >= 32:
        # v7x has 2 TensorCores: split M so a batch-1 call still yields >= 2 parallel steps.
        tm = _round_up((m_total + 1) // 2, 16)
    m_pad = _round_up(m_total, tm)
    grid_m = m_pad // tm

    # ---- wrapper-side layout prep (XLA glue), bf16-first to halve im2col HBM bytes ----
    x_nhwc = jnp.transpose(x_nchw, (0, 2, 3, 1)).astype(jnp.bfloat16)
    xp = jnp.pad(x_nhwc, ((0, 0), (2, 2), (2, 2), (0, 0)))      # spatial pad = 2

    # im2col per pool phase: phase (r, b) covers conv positions (2*py + r, 2*px + b).
    phase_list = []
    for r in range(2):
        for b in range(2):
            taps = [
                xp[:, r + dy: r + dy + 2 * hout: 2, b + dx: b + dx + 2 * wout: 2, :]
                for dy in range(3) for dx in range(3)
            ]
            phase_list.append(jnp.concatenate(taps, axis=-1))   # (N, hout, wout, 9*cin) bf16
    patches = jnp.stack(phase_list, axis=1).reshape(n, 4, m_total, k_dim)
    patches = jnp.pad(patches, ((0, 0), (0, 0), (0, m_pad - m_total), (0, 0)))

    # eval-mode BatchNorm folded into the conv:  y = conv(x, W*scale) + (scale*(b-mean)+beta)
    scale = (gamma / jnp.sqrt(run_var + eps)).astype(jnp.float32)
    bias = ((b_conv - run_mean) * scale + beta).astype(jnp.float32)

    # (Cout, Cin, 3, 3) -> (9*Cin, Cout_pad); K index = (dy*3 + dx)*Cin + ci (matches taps).
    # Fold the BN scale into the weights in f32, then cast to bf16.
    w9 = jnp.transpose(w_oihw.astype(jnp.float32), (2, 3, 1, 0)).reshape(k_dim, cout)
    w9 = w9 * scale[None, :]
    w9 = jnp.pad(w9, ((0, 0), (0, cout_pad - cout))).astype(jnp.bfloat16)
    bias_p = jnp.pad(bias, (0, cout_pad - cout))[None, :]

    out_flat = pl.pallas_call(
        _conv_block_kernel,
        out_shape=jax.ShapeDtypeStruct((n, m_pad, cout_pad), jnp.bfloat16),
        grid_spec=pltpu.PrefetchScalarGridSpec(
            num_scalar_prefetch=0,
            grid=(n, grid_m),
            in_specs=[
                pl.BlockSpec((1, 4, tm, k_dim), lambda i, j: (i, 0, j, 0)),
                pl.BlockSpec((k_dim, cout_pad), lambda i, j: (0, 0)),
                pl.BlockSpec((1, cout_pad), lambda i, j: (0, 0)),
            ],
            out_specs=pl.BlockSpec((1, tm, cout_pad), lambda i, j: (i, j, 0)),
        ),
        compiler_params=pltpu.CompilerParams(
            dimension_semantics=("parallel", "parallel"),
            vmem_limit_bytes=48 * 1024 * 1024,
        ),
    )(patches, w9, bias_p)

    out = out_flat[:, :m_total, :cout].reshape(n, hout, wout, cout)
    return jnp.transpose(out, (0, 3, 1, 2)).astype(jnp.float32)   # back to NCHW, f32 output


if __name__ == "__main__":
    key = jax.random.PRNGKey(0)
    kx, kw, kb, kg, kbe, km, kv = jax.random.split(key, 7)
    N, CIN, COUT, H, W = 2, 4, 8, 16, 16

    x = jax.random.normal(kx, (N, CIN, H, W), jnp.float32)
    w = jax.random.normal(kw, (COUT, CIN, 3, 3), jnp.float32) / np.sqrt(CIN * 9)
    b = 0.1 * jax.random.normal(kb, (COUT,), jnp.float32)
    gamma = 1.0 + 0.2 * jax.random.normal(kg, (COUT,), jnp.float32)
    beta = 0.1 * jax.random.normal(kbe, (COUT,), jnp.float32)
    run_mean = 0.1 * jax.random.normal(km, (COUT,), jnp.float32)
    run_var = jax.random.uniform(kv, (COUT,), jnp.float32, 0.5, 1.5)

    out = jax.block_until_ready(
        conv_block_forward(x, w, b, gamma, beta, run_mean, run_var))

    # pure-JAX f32 reference (same eval-mode BN semantics)
    ref = jax.lax.conv_general_dilated(
        x, w, (1, 1), ((2, 2), (2, 2)),
        dimension_numbers=("NCHW", "OIHW", "NCHW"))
    ref = ref + b[None, :, None, None]
    ref = (ref - run_mean[None, :, None, None]) / jnp.sqrt(run_var[None, :, None, None] + 1e-5)
    ref = ref * gamma[None, :, None, None] + beta[None, :, None, None]
    ref = jnp.maximum(ref, 0.0)
    ref = jax.lax.reduce_window(ref, -jnp.inf, jax.lax.max,
                                (1, 1, 2, 2), (1, 1, 2, 2), "VALID")

    assert out.shape == (N, COUT, (H + 2) // 2, (W + 2) // 2)
    # tolerance accounts for bf16 inputs/weights/output (f32 MXU accumulation) vs pure-f32 ref
    np.testing.assert_allclose(np.asarray(out), np.asarray(ref), rtol=2e-2, atol=5e-2)
    print("KERNEL_OK")
</pallas_src>

<mosaic_0001>
module attributes {stable_mosaic.version = 11 : i64} {
  func.func @_conv_block_kernel(%arg0: i32, %arg1: i32, %arg2: memref<1x4x96x36xbf16, #tpu.memory_space<vmem>>, %arg3: memref<36x128xbf16, #tpu.memory_space<vmem>>, %arg4: memref<1x128xf32, #tpu.memory_space<vmem>>, %arg5: memref<1x96x128xbf16, #tpu.memory_space<vmem>>) attributes {dimension_semantics = [#tpu.dimension_semantics<parallel>, #tpu.dimension_semantics<parallel>], iteration_bounds = array<i64: 2, 1>, scalar_prefetch = 0 : i64, scratch_operands = 0 : i64, tpu.core_type = #tpu.core_type<tc>, window_params = [{transform_indices = @transform_0, window_bounds = array<i64: 1, 4, 96, 36>}, {pipeline_mode = #tpu.pipeline_mode<synchronous>, transform_indices = @transform_1, window_bounds = array<i64: 36, 128>}, {pipeline_mode = #tpu.pipeline_mode<synchronous>, transform_indices = @transform_2, window_bounds = array<i64: 1, 128>}, {transform_indices = @transform_3, window_bounds = array<i64: 1, 96, 128>}]} {
    %c0 = arith.constant 0 : index
    %c0_0 = arith.constant 0 : index
    %0 = vector.load %arg3[%c0, %c0_0] : memref<36x128xbf16, #tpu.memory_space<vmem>>, vector<36x128xbf16>
    %c0_1 = arith.constant 0 : index
    %c0_2 = arith.constant 0 : index
    %c0_3 = arith.constant 0 : index
    %c0_4 = arith.constant 0 : index
    %1 = vector.load %arg2[%c0_1, %c0_2, %c0_3, %c0_4] : memref<1x4x96x36xbf16, #tpu.memory_space<vmem>>, vector<1x1x96x36xbf16>
    %2 = vector.shape_cast %1 : vector<1x1x96x36xbf16> to vector<96x36xbf16>
    %cst = arith.constant dense<0.000000e+00> : vector<96x128xf32>
    %3 = tpu.matmul %2, %0, %cst {dimension_numbers = #tpu.dot_dimension_numbers<[1], [0], [0], [1], [0, 0, 1, 1], [], []>} : vector<96x36xbf16>, vector<36x128xbf16>, vector<96x128xf32> -> vector<96x128xf32>
    %c0_5 = arith.constant 0 : index
    %c1 = arith.constant 1 : index
    %c0_6 = arith.constant 0 : index
    %c0_7 = arith.constant 0 : index
    %4 = vector.load %arg2[%c0_5, %c1, %c0_6, %c0_7] : memref<1x4x96x36xbf16, #tpu.memory_space<vmem>>, vector<1x1x96x36xbf16>
    %5 = vector.shape_cast %4 : vector<1x1x96x36xbf16> to vector<96x36xbf16>
    %cst_8 = arith.constant dense<0.000000e+00> : vector<96x128xf32>
    %6 = tpu.matmul %5, %0, %cst_8 {dimension_numbers = #tpu.dot_dimension_numbers<[1], [0], [0], [1], [0, 0, 1, 1], [], []>} : vector<96x36xbf16>, vector<36x128xbf16>, vector<96x128xf32> -> vector<96x128xf32>
    %7 = arith.maximumf %3, %6 : vector<96x128xf32>
    %c0_9 = arith.constant 0 : index
    %c2 = arith.constant 2 : index
    %c0_10 = arith.constant 0 : index
    %c0_11 = arith.constant 0 : index
    %8 = vector.load %arg2[%c0_9, %c2, %c0_10, %c0_11] : memref<1x4x96x36xbf16, #tpu.memory_space<vmem>>, vector<1x1x96x36xbf16>
    %9 = vector.shape_cast %8 : vector<1x1x96x36xbf16> to vector<96x36xbf16>
    %cst_12 = arith.constant dense<0.000000e+00> : vector<96x128xf32>
    %10 = tpu.matmul %9, %0, %cst_12 {dimension_numbers = #tpu.dot_dimension_numbers<[1], [0], [0], [1], [0, 0, 1, 1], [], []>} : vector<96x36xbf16>, vector<36x128xbf16>, vector<96x128xf32> -> vector<96x128xf32>
    %11 = arith.maximumf %7, %10 : vector<96x128xf32>
    %c0_13 = arith.constant 0 : index
    %c3 = arith.constant 3 : index
    %c0_14 = arith.constant 0 : index
    %c0_15 = arith.constant 0 : index
    %12 = vector.load %arg2[%c0_13, %c3, %c0_14, %c0_15] : memref<1x4x96x36xbf16, #tpu.memory_space<vmem>>, vector<1x1x96x36xbf16>
    %13 = vector.shape_cast %12 : vector<1x1x96x36xbf16> to vector<96x36xbf16>
    %cst_16 = arith.constant dense<0.000000e+00> : vector<96x128xf32>
    %14 = tpu.matmul %13, %0, %cst_16 {dimension_numbers = #tpu.dot_dimension_numbers<[1], [0], [0], [1], [0, 0, 1, 1], [], []>} : vector<96x36xbf16>, vector<36x128xbf16>, vector<96x128xf32> -> vector<96x128xf32>
    %15 = arith.maximumf %11, %14 : vector<96x128xf32>
    %c0_17 = arith.constant 0 : index
    %c0_18 = arith.constant 0 : index
    %16 = vector.load %arg4[%c0_17, %c0_18] : memref<1x128xf32, #tpu.memory_space<vmem>>, vector<1x128xf32>
    %17 = vector.broadcast %16 : vector<1x128xf32> to vector<96x128xf32>
    %18 = arith.addf %15, %17 : vector<96x128xf32>
    %cst_19 = arith.constant 0.000000e+00 : f32
    %19 = vector.broadcast %cst_19 : f32 to vector<96x128xf32>
    %20 = arith.maximumf %18, %19 : vector<96x128xf32>
    %21 = arith.truncf %20 : vector<96x128xf32> to vector<96x128xbf16>
    %c0_20 = arith.constant 0 : index
    %c0_21 = arith.constant 0 : index
    %c0_22 = arith.constant 0 : index
    %22 = vector.load %arg5[%c0_20, %c0_21, %c0_22] : memref<1x96x128xbf16, #tpu.memory_space<vmem>>, vector<1x96x128xbf16>
    %23 = vector.shape_cast %22 : vector<1x96x128xbf16> to vector<96x128xbf16>
    %24 = vector.shape_cast %21 : vector<96x128xbf16> to vector<1x96x128xbf16>
    tpu.vector_store %arg5[%c0_20, %c0_21, %c0_22], %24 {strides = array<i32>} : memref<1x96x128xbf16, #tpu.memory_space<vmem>>, vector<1x96x128xbf16>,
    return
  }
  func.func @transform_0(%arg0: i32, %arg1: i32) -> (i32, i32, i32, i32) {
    %c0_i32 = arith.constant 0 : i32
    %c0_i32_0 = arith.constant 0 : i32
    %c0_i32_1 = arith.constant 0 : i32
    return %arg0, %c0_i32, %arg1, %c0_i32_0 : i32, i32, i32, i32
  }
  func.func @transform_1(%arg0: i32, %arg1: i32) -> (i32, i32) {
    %c0_i32 = arith.constant 0 : i32
    %c0_i32_0 = arith.constant 0 : i32
    %c0_i32_1 = arith.constant 0 : i32
    return %c0_i32, %c0_i32_0 : i32, i32
  }
  func.func @transform_2(%arg0: i32, %arg1: i32) -> (i32, i32) {
    %c0_i32 = arith.constant 0 : i32
    %c0_i32_0 = arith.constant 0 : i32
    %c0_i32_1 = arith.constant 0 : i32
    return %c0_i32, %c0_i32_0 : i32, i32
  }
  func.func @transform_3(%arg0: i32, %arg1: i32) -> (i32, i32, i32) {
    %c0_i32 = arith.constant 0 : i32
    %c0_i32_0 = arith.constant 0 : i32
    return %arg0, %arg1, %c0_i32 : i32, i32, i32
  }
}

</mosaic_0001>

<bundles_post_ra>
// kernel: tpu_custom_call.1
= control target key start
LH: loop header
LB: loop body
LE: loop exit
PB: predicated region body
PF: predicated region fallthrough
CT: control target
= control target key end

     0   :  { %8 = vsyncpa [#allocation3], 0  ;;  %s1709_s0 = inlined_call_operand.vmem [shape: bf16[2,4,96,36], index: 0, kind: input, shape index: {}]   ;;  %s1710_s1 = inlined_call_operand.vmem [shape: bf16[36,128], index: 1, kind: input, shape index: {}]   ;;  %s1711_s2 = inlined_call_operand.vmem [shape: f32[1,128], index: 2, kind: input, shape index: {}]   ;;  %s1712_s3 = inlined_call_operand.hbm [shape: bf16[2,96,128], index: 3, kind: output, shape index: {}]  }
   0x1   :  { %10 = vsyncpa [#allocation3 + $0x1], 0  ;;  %s1471_s12 = smov 0   ;;  %s1473_s13 = smov 0  }
   0x2   :  { %s1475_s14 = smov 0   ;;  %s1477_s15 = smov 0  }
   0x3   :  { %s1479_s16 = smov 0   ;;  %s1481_s17 = smov 0  }
   0x4 LB: > { %s1015_s18 = sadd.s32 4294967295, %s1446_s17   ;;  %s1016_s19 = sadd.s32 4294967294, %s1446_s17   ;;  %s1446_s17 = sphi %s1481_s17, %s16_s17   ;;  %s1442_s16 = sphi %s1479_s16, %s1719_s16   ;;  %s1438_s15 = sphi %s1477_s15, %s1718_s15   ;;  %s1434_s14 = sphi %s1475_s14, %s1717_s14   ;;  %s1430_s13 = sphi %s1473_s13, %s1716_s13   ;;  %s1426_s12 = sphi %s1471_s12, %s1715_s12  }
   0x5   : > { %s28_s20 = sadd.s32 1, %s1442_s16  ;;  %s107_s21 = sadd.s32 1, %s1434_s14 }
   0x6   : > { %p30_p0 = scmp.ge.s32.totalorder %s28_s20, 2  ;;  %p117_p1 = scmp.ne.s32.totalorder %s1434_s14, %s1430_s13 }
   0x7   : > { %p118_p2 = scmp.eq.s32.totalorder %s1015_s18, 1  ;;  %p123_p3 = scmp.ne.s32.totalorder %s1430_s13, %s1426_s12 }
   0x8   : > { %s1721_s20 = smov (%p30_p0, %s28_s20), 0  ;;  %p124_p5 = scmp.eq.s32.totalorder %s1016_s19, 1 }
   0x9   : > { %p1511_p4 = por %p118_p2, %p117_p1  ;;  %s102_s23 = ssub.s32 %s1442_s16, %s1721_s20 }
   0xa   : > { %p1019_p6 = scmp.ge.s32.totalorder %s1446_s17, 1  ;;  %p105_p7 = scmp.eq.s32.totalorder %s102_s23, 0 }
   0xb   : > { %p1518_p8 = por %p124_p5, %p123_p3  ;;  %p161_p9 = scmp.lt.s32.totalorder %s1446_s17, 3 }
   0xc   : > { %s1524_s25 = scalar_select %p105_p7, %s1434_s14, %s107_s21  }
   0xd   : > { %p162_p10 = pnand %p1019_p6, %p161_p9 }
   0xe   : > { %p190_p11 = scmp.lt.s32.totalorder (!%p162_p10), %s1438_s15, 1  ;;  %s186_s18 = sand.u32 (!%p162_p10), 1, %s1430_s13  }
   0xf   : > { %165 = sbr.rel (%p162_p10) target bundleno = 296 (0x128), region = 32  ;;  %s1448_s4 = smov (!%p162_p10), [#allocation2]  }
  0x10   : > { %s1283_s19 = smul.u32 (!%p162_p10), 48, %s186_s18  ;;  %s1374_s5 = sshll.u32 (!%p162_p10), %s1448_s4, 4  ;;  %s1375_s5 = int_to_ptr.vmem [resolvable:$false] %s1374_s5 }
  0x11   : > { %s1285_s23 = smul.u32 (!%p162_p10), 768, %s1438_s15 }
  0x12   : > { %s1631_s21 = scalar_lea.vmem (!%p162_p10), [#allocation2], %s1283_s19 }
  0x13   : > { %s936_s26 = sshll.u32 (!%p162_p10), %s1631_s21, 4  ;;  %s1657_s29 = scalar_lea.hbm (!%p162_p10), %s1712_s3, %s1285_s23  ;;  %s1659_s26 = int_to_ptr.vmem [resolvable:$true] %s936_s26 }
  0x14   : > { %v1343_v0 = vld [vmem:[%s1710_s1 + $0x10] ss:$0 sps:$4 sm:$0x33]   ;;  %vm282_vm0 = vcmask 1041408   ;;  %v1344_v1 = vld [vmem:[%s1710_s1 + $0x8] sm:$0xff]   ;;  %s191_s30 = scalar_select %p190_p11, %s1438_s15, 1 }
  0x15   : > { %1279 = vmatprep.subr.msk.bf16.mxu0 %vm282_vm0, %v1343_v0  ;;  %1280 = vmatprep.subr.msk.bf16.mxu1 %vm282_vm0, %v1343_v0  ;;  %v284_v2 = vsel %vm282_vm0, %v1343_v0, 0  ;;  %v1345_v3 = vld [vmem:[%s1710_s1] sm:$0xff]   ;;  %vm263_vm1 = vcmask 293888   ;;  %s1664_s15 = scalar_lea.sflag [#allocation3], %s186_s18  ;;  %p1377_p1 = scmp.lt.s32.totalorder %s1659_s26, %s1375_s5 }
  0x16   : > { %1208 = vmatpush3.bf16.msra.mxu0 %v284_v2  ;;  %1226 = vmatpush3.bf16.msra.mxu1 %v284_v2  ;;  %s1284_s6 = smul.u32 192, %s191_s30  ;;  %v1618_v62 = vld [vmem:[%s1711_s2] ss:$0 sm:$0xff]  ;;  %s1370_s30 = scalar_lea.vmem %s1659_s26, 768 }
  0x17   : > { %1209 = vmatprep.subr.bf16.mxu0 %v1344_v1  ;;  %1227 = vmatprep.subr.bf16.mxu1 %v1344_v1  ;;  %p1371_p12 = scmp.ne.s32.totalorder %s1659_s26, %s1370_s30 }
  0x18   : > { %s1543_s9 = scalar_lea.vmem %s1709_s0, %s1284_s6  ;;  %s1376_s6 = scalar_lea.vmem %s1375_s5, 1536 }
  0x19   : > { %v1346_v4 = vld [vmem:[%s1543_s9] sm:$0xff]   ;;  %v1347_v5 = vld [vmem:[%s1543_s9 + $0x30] sm:$0xff]   ;;  %v1348_v6 = vld [vmem:[%s1543_s9 + $0x8] sm:$0xff]   ;;  %p1372_p13 = pnand %p1371_p12, %p1511_p4  ;;  %p1378_p2 = scmp.lt.s32.totalorder %s1376_s6, %s1370_s30 }
  0x1a   : > { %1210 = vmatpush3.bf16.msra.mxu0 %v1344_v1  ;;  %1228 = vmatpush3.bf16.msra.mxu1 %v1344_v1  ;;  %v1349_v7 = vld [vmem:[%s1543_s9 + $0x38] sm:$0xff]   ;;  %v1350_v8 = vld [vmem:[%s1543_s9 + $0x10] sm:$0xff]   ;;  %v1351_v9 = vld [vmem:[%s1543_s9 + $0x40] sm:$0xff]  }
  0x1b   : > { %1211 = vmatprep.subr.bf16.mxu0 %v1345_v3  ;;  %1229 = vmatprep.subr.bf16.mxu1 %v1345_v3  ;;  %v1352_v10 = vld [vmem:[%s1543_s9 + $0x18] sm:$0xff]   ;;  %v1353_v11 = vld [vmem:[%s1543_s9 + $0x48] sm:$0xff]   ;;  %v1354_v12 = vld [vmem:[%s1543_s9 + $0x20] sm:$0xff]   ;;  %p1373_p0 = pneg %p1372_p13  ;;  %p1379_p3 = por %p1378_p2, %p1377_p1 }
  0x1c   : > { %1213 = vmatprep.mubr.msk.bf16.mxu0 %vm263_vm1, %v1346_v4  ;;  %1231 = vmatprep.mubr.msk.bf16.mxu1 %vm263_vm1, %v1347_v5  ;;  %v1355_v13 = vld [vmem:[%s1543_s9 + $0x50] sm:$0xff]   ;;  %v1356_v14 = vld [vmem:[%s1543_s9 + $0x28] sm:$0xff]   ;;  %v1357_v15 = vld [vmem:[%s1543_s9 + $0x58] sm:$0xff]  }
  0x1d   : > { %v1358_v16 = vld [vmem:[%s1543_s9 + $0x60] sm:$0xff]   ;;  %v1359_v17 = vld [vmem:[%s1543_s9 + $0x90] sm:$0xff]   ;;  %v1360_v18 = vld [vmem:[%s1543_s9 + $0x68] sm:$0xff]   ;;  %p1380_p5 = pnand %p1379_p3, %p1373_p0 }
  0x1e   : > { %1212 = vmatpush3.bf16.msra.mxu0 %v1345_v3  ;;  %1230 = vmatpush3.bf16.msra.mxu1 %v1345_v3  ;;  %v1361_v19 = vld [vmem:[%s1543_s9 + $0x98] sm:$0xff]   ;;  %v1362_v20 = vld [vmem:[%s1543_s9 + $0x70] sm:$0xff]   ;;  %v1363_v21 = vld [vmem:[%s1543_s9 + $0xa0] sm:$0xff]  }
  0x1f   : > { %1281 = vmatprep.subr.msk.bf16.mxu0 %vm282_vm0, %v1343_v0  ;;  %1282 = vmatprep.subr.msk.bf16.mxu1 %vm282_vm0, %v1343_v0  ;;  %v1364_v22 = vld [vmem:[%s1543_s9 + $0x78] sm:$0xff]   ;;  %v1365_v23 = vld [vmem:[%s1543_s9 + $0xa8] sm:$0xff]   ;;  %v1366_v24 = vld [vmem:[%s1543_s9 + $0x80] sm:$0xff]  }
  0x20   : > { %v1367_v25 = vld [vmem:[%s1543_s9 + $0xb0] sm:$0xff]   ;;  %v1368_v26 = vld [vmem:[%s1543_s9 + $0x88] sm:$0xff]   ;;  %v1369_v27 = vld [vmem:[%s1543_s9 + $0xb8] sm:$0xff]  }
  0x21   : > { %1214 = vmatmul.mubr.msk.bf16.vlgmr.msra.gmra.mxu0 %vm263_vm1, %v1348_v6  ;;  %1232 = vmatmul.mubr.msk.bf16.vlgmr.msra.gmra.mxu1 %vm263_vm1, %v1349_v7 }
  0x22   : > { %1244 = vmatpush3.bf16.msra.mxu0 %v284_v2  ;;  %1262 = vmatpush3.bf16.msra.mxu1 %v284_v2 }
  0x23   : > { %1217 = vmatprep.mubr.msk.bf16.mxu0 %vm263_vm1, %v1350_v8  ;;  %1235 = vmatprep.mubr.msk.bf16.mxu1 %vm263_vm1, %v1351_v9 }
  0x24   : > { %1245 = vmatprep.subr.bf16.mxu0 %v1344_v1  ;;  %1263 = vmatprep.subr.bf16.mxu1 %v1344_v1 }
  0x26   : > { %1246 = vmatpush3.bf16.msra.mxu0 %v1344_v1  ;;  %1264 = vmatpush3.bf16.msra.mxu1 %v1344_v1 }
  0x27   : > { %1247 = vmatprep.subr.bf16.mxu0 %v1345_v3  ;;  %1265 = vmatprep.subr.bf16.mxu1 %v1345_v3 }
  0x29   : > { %1218 = vmatmul.mubr.msk.bf16.gmra.mxu0 %vm263_vm1, %v1352_v10  ;;  %1236 = vmatmul.mubr.msk.bf16.gmra.mxu1 %vm263_vm1, %v1353_v11 }
  0x2a   : > { %1221 = vmatprep.mubr.msk.bf16.mxu0 %vm263_vm1, %v1354_v12  ;;  %1239 = vmatprep.mubr.msk.bf16.mxu1 %vm263_vm1, %v1355_v13 }
  0x2b   : > { %1248 = vmatpush3.bf16.msra.mxu0 %v1345_v3  ;;  %1266 = vmatpush3.bf16.msra.mxu1 %v1345_v3 }
  0x31   : > { %1222 = vmatmul.mubr.msk.bf16.gmra.mxu0 %vm263_vm1, %v1356_v14  ;;  %1240 = vmatmul.mubr.msk.bf16.gmra.mxu1 %vm263_vm1, %v1357_v15 }
  0x32   : > { %1249 = vmatprep.mubr.msk.bf16.mxu0 %vm263_vm1, %v1358_v16  ;;  %1267 = vmatprep.mubr.msk.bf16.mxu1 %vm263_vm1, %v1359_v17 }
  0x39   : > { %1250 = vmatmul.mubr.msk.bf16.vlgmr.msra.gmra.mxu0 %vm263_vm1, %v1360_v18  ;;  %1268 = vmatmul.mubr.msk.bf16.vlgmr.msra.gmra.mxu1 %vm263_vm1, %v1361_v19 }
  0x3a   : > { %1253 = vmatprep.mubr.msk.bf16.mxu0 %vm263_vm1, %v1362_v20  ;;  %1271 = vmatprep.mubr.msk.bf16.mxu1 %vm263_vm1, %v1363_v21 }
  0x41   : > { %1254 = vmatmul.mubr.msk.bf16.gmra.mxu0 %vm263_vm1, %v1364_v22  ;;  %1272 = vmatmul.mubr.msk.bf16.gmra.mxu1 %vm263_vm1, %v1365_v23 }
  0x42   : > { %1257 = vmatprep.mubr.msk.bf16.mxu0 %vm263_vm1, %v1366_v24  ;;  %1275 = vmatprep.mubr.msk.bf16.mxu1 %vm263_vm1, %v1367_v25 }
  0x49   : > { %1258 = vmatmul.mubr.msk.bf16.gmra.mxu0 %vm263_vm1, %v1368_v26  ;;  %1276 = vmatmul.mubr.msk.bf16.gmra.mxu1 %vm263_vm1, %v1369_v27 }
  0xe1   : > { %v1215_v28 = vpop.f32.mrf.mxu0  ;;  %v1233_v29 = vpop.f32.mrf.mxu1 }
  0xe2   : > { %v511_v52 = vmax.f32 %v1215_v28, %v1233_v29 }
  0xe3   : > { %v320_v30 = vpop.f32.mrf.mxu0  ;;  %v462_v31 = vpop.f32.mrf.mxu1 }
  0xe4   : > { %v509_v55 = vmax.f32 %v320_v30, %v462_v31 }
  0xe5   : > { %v1216_v32 = vpop.f32.mrf.mxu0  ;;  %v1234_v33 = vpop.f32.mrf.mxu1 }
  0xe6   : > { %v512_v59 = vmax.f32 %v1216_v32, %v1234_v33 }
  0xe7   : > { %v323_v34 = vpop.f32.mrf.mxu0  ;;  %v465_v35 = vpop.f32.mrf.mxu1 }
  0xe8   : > { %v510_v1 = vmax.f32 %v323_v34, %v465_v35 }
  0xe9   : > { %v1219_v36 = vpop.f32.mrf.mxu0  ;;  %v1237_v37 = vpop.f32.mrf.mxu1 }
  0xea   : > { %v515_v6 = vmax.f32 %v1219_v36, %v1237_v37 }
  0xeb   : > { %v336_v38 = vpop.f32.mrf.mxu0  ;;  %v478_v39 = vpop.f32.mrf.mxu1 }
  0xec   : > { %v513_v10 = vmax.f32 %v336_v38, %v478_v39 }
  0xed   : > { %v1220_v40 = vpop.f32.mrf.mxu0  ;;  %v1238_v41 = vpop.f32.mrf.mxu1 }
  0xee   : > { %v516_v23 = vmax.f32 %v1220_v40, %v1238_v41 }
  0xef   : > { %v1595_v42 = vpop.f32.mrf.mxu0  ;;  %v1597_v43 = vpop.f32.mrf.mxu1 }
  0xf0   : > { %v514_v24 = vmax.f32 %v1595_v42, %v1597_v43 }
  0xf1   : > { %v1599_v44 = vpop.f32.mrf.mxu0  ;;  %v1601_v45 = vpop.f32.mrf.mxu1 }
  0xf2   : > { %v519_v35 = vmax.f32 %v1599_v44, %v1601_v45 }
  0xf3   : > { %v1603_v46 = vpop.f32.mrf.mxu0  ;;  %v1605_v47 = vpop.f32.mrf.mxu1 }
  0xf4   : > { %v517_v42 = vmax.f32 %v1603_v46, %v1605_v47 }
  0xf5   : > { %v1607_v48 = vpop.f32.mrf.mxu0  ;;  %v1609_v49 = vpop.f32.mrf.mxu1 }
  0xf7   : > { %v1611_v50 = vpop.f32.mrf.mxu0  ;;  %v1613_v51 = vpop.f32.mrf.mxu1 }
  0xf9   : > { %v1251_v53 = vpop.f32.mrf.mxu0  ;;  %v1269_v54 = vpop.f32.mrf.mxu1 }
  0xfa   : > { %v665_v56 = vmax.f32 %v511_v52, %v1251_v53 }
  0xfb   : > { %v616_v57 = vpop.f32.mrf.mxu0  ;;  %v770_v58 = vpop.f32.mrf.mxu1 }
  0xfc   : > { %v819_v60 = vmax.f32 %v665_v56, %v1269_v54  ;;  %v663_v61 = vmax.f32 %v509_v55, %v616_v57  ;;  %v520_v55 = vmax.f32 %v1607_v48, %v1609_v49 }
  0xfd   : > { %v1252_v63 = vpop.f32.mrf.mxu0  ;;  %v1270_v0 = vpop.f32.mrf.mxu1 }
  0xfe   : > { %v817_v2 = vmax.f32 %v663_v61, %v770_v58  ;;  %v666_v3 = vmax.f32 %v512_v59, %v1252_v63  ;;  %v838_v7 = vadd.f32 %v1618_v62, %v819_v60 }
  0xff   : > { %v619_v4 = vpop.f32.mrf.mxu0  ;;  %v773_v5 = vpop.f32.mrf.mxu1 }
 0x100   : > { %v820_v8 = vmax.f32 %v666_v3, %v1270_v0  ;;  %v664_v9 = vmax.f32 %v510_v1, %v619_v4  ;;  %v836_v13 = vadd.f32 %v1618_v62, %v817_v2  ;;  %v850_v19 = vmax.f32 %v838_v7, 0.0 }
 0x101   : > { %v1255_v11 = vpop.f32.mrf.mxu0  ;;  %v1273_v12 = vpop.f32.mrf.mxu1  ;;  %v518_v1 = vmax.f32 %v1611_v50, %v1613_v51 }
 0x102   : > { %v839_v14 = vadd.f32 %v1618_v62, %v820_v8  ;;  %v818_v15 = vmax.f32 %v664_v9, %v773_v5  ;;  %v669_v16 = vmax.f32 %v515_v6, %v1255_v11  ;;  %v848_v28 = vmax.f32 %v836_v13, 0.0 }
 0x103   : > { %v632_v17 = vpop.f32.mrf.mxu0  ;;  %v786_v18 = vpop.f32.mrf.mxu1 }
 0x104   : > { %v851_v20 = vmax.f32 %v839_v14, 0.0  ;;  %v837_v21 = vadd.f32 %v1618_v62, %v818_v15  ;;  %v667_v22 = vmax.f32 %v513_v10, %v632_v17  ;;  %v823_v25 = vmax.f32 %v669_v16, %v1273_v12 }
 0x105   : > { %v1256_v26 = vpop.f32.mrf.mxu0  ;;  %v1274_v27 = vpop.f32.mrf.mxu1 }
 0x106   : > { %v1144_v29 = vpack.c.bf16 %v851_v20, %v850_v19  ;;  %v849_v30 = vmax.f32 %v837_v21, 0.0  ;;  %v821_v31 = vmax.f32 %v667_v22, %v786_v18  ;;  %v670_v32 = vmax.f32 %v516_v23, %v1256_v26 }
 0x107   : > { %v635_v33 = vpop.f32.mrf.mxu0  ;;  %v789_v34 = vpop.f32.mrf.mxu1  ;;  %v842_v38 = vadd.f32 %v1618_v62, %v823_v25 }
 0x108   : > { %1166 = vst [vmem:[%s1631_s21 + $0x8] sm:$0xff] %v1144_v29   ;;  %v1139_v36 = vpack.c.bf16 %v849_v30, %v848_v28  ;;  %v668_v37 = vmax.f32 %v514_v24, %v635_v33  ;;  %v824_v39 = vmax.f32 %v670_v32, %v1274_v27  ;;  %v840_v43 = vadd.f32 %v1618_v62, %v821_v31 }
 0x109   : > { %v1259_v40 = vpop.f32.mrf.mxu0  ;;  %v1277_v41 = vpop.f32.mrf.mxu1  ;;  %v854_v59 = vmax.f32 %v842_v38, 0.0 }
 0x10a   : > { %1140 = vst [vmem:[%s1631_s21] sm:$0xff] %v1139_v36   ;;  %v822_v52 = vmax.f32 %v668_v37, %v789_v34  ;;  %v673_v44 = vmax.f32 %v519_v35, %v1259_v40  ;;  %v843_v45 = vadd.f32 %v1618_v62, %v824_v39  ;;  %v852_v60 = vmax.f32 %v840_v43, 0.0 }
 0x10b   : > { %v648_v53 = vpop.f32.mrf.mxu0  ;;  %v802_v54 = vpop.f32.mrf.mxu1 }
 0x10c   : > { %v841_v56 = vadd.f32 %v1618_v62, %v822_v52  ;;  %v827_v57 = vmax.f32 %v673_v44, %v1277_v41  ;;  %v671_v58 = vmax.f32 %v517_v42, %v648_v53  ;;  %v855_v46 = vmax.f32 %v843_v45, 0.0 }
 0x10d   : > { %v1260_v47 = vpop.f32.mrf.mxu0  ;;  %v1278_v0 = vpop.f32.mrf.mxu1 }
 0x10e   : > { %v853_v61 = vmax.f32 %v841_v56, 0.0  ;;  %v674_v63 = vmax.f32 %v520_v55, %v1260_v47  ;;  %v1154_v2 = vpack.c.bf16 %v855_v46, %v854_v59  ;;  %v825_v3 = vmax.f32 %v671_v58, %v802_v54 }
 0x10f   : > { %v651_v48 = vpop.f32.mrf.mxu0  ;;  %v846_v4 = vadd.f32 %v1618_v62, %v827_v57  ;;  %v805_v8 = vpop.f32.mrf.mxu1 }
 0x110   : > { %v1149_v49 = vpack.c.bf16 %v853_v61, %v852_v60  ;;  %v828_v5 = vmax.f32 %v674_v63, %v1278_v0  ;;  %1168 = vst [vmem:[%s1631_s21 + $0x18] sm:$0xff] %v1154_v2   ;;  %v672_v6 = vmax.f32 %v518_v1, %v651_v48  ;;  %v844_v50 = vadd.f32 %v1618_v62, %v825_v3 }
 0x111   : > { %v858_v9 = vmax.f32 %v846_v4, 0.0 }
 0x112   : > { %1167 = vst [vmem:[%s1631_s21 + $0x10] sm:$0xff] %v1149_v49   ;;  %v847_v7 = vadd.f32 %v1618_v62, %v828_v5  ;;  %v826_v51 = vmax.f32 %v672_v6, %v805_v8  ;;  %v856_v13 = vmax.f32 %v844_v50, 0.0 }
 0x114   : > { %v859_v10 = vmax.f32 %v847_v7, 0.0  ;;  %v845_v11 = vadd.f32 %v1618_v62, %v826_v51 }
 0x116   : > { %v1164_v12 = vpack.c.bf16 %v859_v10, %v858_v9  ;;  %v857_v14 = vmax.f32 %v845_v11, 0.0 }
 0x118   : > { %1170 = vst [vmem:[%s1631_s21 + $0x28] sm:$0xff] %v1164_v12   ;;  %v1159_v15 = vpack.c.bf16 %v857_v14, %v856_v13 }
 0x11a   : > { %1169 = vst [vmem:[%s1631_s21 + $0x20] sm:$0xff] %v1159_v15  }
 0x11b   : > { %1383 = shalt.err (!%p1380_p5)
}
 0x11c   : > { %s1384_s7 = scalar_lea.hbm %s1657_s29, 768  ;;  %s1388_s10 = scalar_lea.hbm %s1712_s3, 1536 }
 0x11d   : > { %p1385_p6 = scmp.ne.s32.totalorder %s1657_s29, %s1384_s7  ;;  %p1389_p10 = scmp.lt.s32.totalorder %s1657_s29, %s1712_s3 }
 0x11e   : > { %p1390_p11 = scmp.lt.s32.totalorder %s1388_s10, %s1384_s7 }
 0x11f   : > { %p1386_p7 = pnand %p1385_p6, %p1511_p4 }
 0x120   : > { %p1391_p12 = por %p1390_p11, %p1389_p10 }
 0x121   : > { %p1387_p9 = pneg %p1386_p7 }
 0x123   : > { %p1392_p13 = pnand %p1391_p12, %p1387_p9 }
 0x125   : > { %1395 = shalt.err (!%p1392_p13)
}
 0x126   : > { %s1449_s19 = smov 64   ;;  %s1450_s21 = smov 4  }
 0x127   : > { %1286 = dma.vmem_to_hbm [thread:$0]  (%p1511_p4), %s1659_s26, 768, %s1657_s29, %s1664_s15, %s1449_s19, %s1449_s19, %s1450_s21  }
 0x128 PF: > { %p1292_p0 = scmp.ge.s32.totalorder %s1446_s17, 2  ;;  %s951_s23 = sand.u32 1, %s1426_s12  }
 0x129   : > { %s952_s27 = scalar_lea.sflag [#allocation3], %s951_s23 }
 0x12a   : > { %p1289_p1 = pnand %p1292_p0, %p1518_p8 }
 0x12c   : > { %p1290_p2 = pneg %p1289_p1 }
 0x12e   : > { %1421 = dma.done.wait (%p1290_p2), %s952_s27, 768  }
 0x12f   : > { %1423 = vsyncadd (%p1290_p2), %s952_s27, 4294966528  ;;  %s16_s17 = sadd.s32 1, %s1446_s17   ;;  %s1715_s12 = smov %s1430_s13 }
 0x130   : > { %p13_p3 = scmp.ge.s32.totalorder %s16_s17, 4   ;;  %s1716_s13 = smov %s1434_s14 }
 0x131   : > { %s1717_s14 = smov %s1524_s25  ;;  %s1718_s15 = smov %s1442_s16 }
 0x132   : > { %s1719_s16 = smov %s1721_s20  ;;  %15 = sbr.rel (!%p13_p3) target bundleno = 4 (0x4), region = 70 }
 0x137   :  { %957 = vsyncpa [#allocation3], 1 }
 0x138   :  { %959 = vsyncpa [#allocation3 + $0x1], 1 }

</bundles_post_ra>
